<compile_context>
chip_gen: v6e
topology: v6e:2x2x1
jax: 0.10.0
libtpu: 0.0.40
codegen_flags: <defaults>
</compile_context>

<pallas_src>
import numpy as np
from functools import partial

import jax
import jax.numpy as jnp
from jax.experimental import pallas as pl
from jax.experimental.pallas import tpu as pltpu

N_VERTS = 512          # synthetic number of mesh vertices (real BFM has ~28k)
N_ID = 30              # identity PCA components   (alpha)
N_EXP = 20             # expression PCA components (delta)
N_LM = 68              # landmarks
LANE = 128
C_TOTAL = N_ID + N_EXP     # 50 PCA coefficients
C_PAD = 64                 # coefficient (K) dim padded for clean MXU tiling
LM_PAD = LANE              # 68 landmarks lane-padded to 128 columns
F_SUBLANE = 8              # frames padded to the f32 sublane tile (min MXU LHS rows)


def _round_up(x, m):
    return ((x + m - 1) // m) * m


# ----------------------------------------------------------------------------
# Fused kernel (one lane tile of points, ALL frames at once):
#   g_d = C (F,Cp) @ Et[d] (Cp,T) + mu[d]           d in {x,y,z}   (bf16 MXU, f32 acc)
#   x = M00*gx + M01*gy + M02*gz ;  y = M10*... ;  w = M30*...
#   out = [x/w ; y/w]                               (single lane-dense store)
# The homogeneous 4th component is ZERO exactly as in the PyTorch reference,
# so the translation column of M never contributes.
# ----------------------------------------------------------------------------
def _fit_kernel(c_ref, m_ref, et_ref, mu_ref, o_ref):
    c = c_ref[...]                      # (F_pad, C_PAD)  bf16
    m = m_ref[...]                      # (F_pad, 9)      f32, rows 0/1/3 of M[:, :3]
    mu = mu_ref[...]                    # (3, T)          f32
    gx = jnp.dot(c, et_ref[0], preferred_element_type=jnp.float32) + mu[0:1, :]
    gy = jnp.dot(c, et_ref[1], preferred_element_type=jnp.float32) + mu[1:2, :]
    gz = jnp.dot(c, et_ref[2], preferred_element_type=jnp.float32) + mu[2:3, :]
    x = m[:, 0:1] * gx + m[:, 1:2] * gy + m[:, 2:3] * gz
    y = m[:, 3:4] * gx + m[:, 4:5] * gy + m[:, 5:6] * gz
    w = m[:, 6:7] * gx + m[:, 7:8] * gy + m[:, 8:9] * gz
    inv_w = pl.reciprocal(w, approx=True)        # EUP slot, not VALU divides
    o_ref[...] = jnp.stack([x * inv_w, y * inv_w], axis=0)   # (2, F_pad, T)


def fit_points(c, m, Et3, mu3, *, tile):
    """c: (F_pad, C_PAD) bf16 coefficients, m: (F_pad, 9) f32 camera coeffs,
    Et3: (3, C_PAD, Lp) bf16 coordinate-major basis, mu3: (3, Lp) f32 mean.
    Returns (2, F_pad, Lp) f32 screen coords (plane 0 = x, plane 1 = y)."""
    _, _, lp = Et3.shape
    f_pad = c.shape[0]
    assert lp % tile == 0 and tile % LANE == 0
    n_tiles = lp // tile

    flops = 2 * f_pad * C_PAD * 3 * lp + 17 * f_pad * lp
    bytes_accessed = (3 * C_PAD * lp * 2 + 3 * lp * 4 + f_pad * C_PAD * 2
                      + f_pad * 9 * 4 + 2 * f_pad * lp * 4)

    return pl.pallas_call(
        _fit_kernel,
        out_shape=jax.ShapeDtypeStruct((2, f_pad, lp), jnp.float32),
        grid_spec=pltpu.PrefetchScalarGridSpec(
            num_scalar_prefetch=0,
            grid=(n_tiles,),
            in_specs=[
                pl.BlockSpec((f_pad, C_PAD), lambda j: (0, 0)),    # coeffs, resident
                pl.BlockSpec((f_pad, 9), lambda j: (0, 0)),        # camera, resident
                pl.BlockSpec((3, C_PAD, tile), lambda j: (0, 0, j)),  # basis tile
                pl.BlockSpec((3, tile), lambda j: (0, j)),            # mean tile
            ],
            out_specs=pl.BlockSpec((2, f_pad, tile), lambda j: (0, 0, j)),
        ),
        compiler_params=pltpu.CompilerParams(dimension_semantics=("parallel",)),
        cost_estimate=pl.CostEstimate(flops=flops,
                                      transcendentals=f_pad * lp,
                                      bytes_accessed=bytes_accessed),
    )(c, m, Et3, mu3)


@partial(jax.jit, static_argnames=("tile",))
def _fit_all_frames(alpha, delta, R, VP3, Et3, mu3, *, tile):
    """Build the per-frame coefficient and camera blocks and run one batched
    pallas_call covering every frame."""
    num_frames = delta.shape[0]
    f_pad = _round_up(num_frames, F_SUBLANE)
    # PCA coefficients (sqrt(sigma) already folded into the basis rows).
    coeff = jnp.concatenate(
        [jnp.broadcast_to(alpha, (num_frames, N_ID)), delta], axis=1)      # (F, 50)
    c = jnp.pad(coeff,
                ((0, f_pad - num_frames), (0, C_PAD - C_TOTAL))).astype(jnp.bfloat16)
    # Camera coefficients: rows (0,1,3) x cols 0:3 of M = V@P@T; since the
    # homogeneous coordinate is 0 this is just VP3 @ R[frame].
    m = jnp.einsum("ij,fjk->fik", VP3, R).reshape(num_frames, 9)
    m = jnp.pad(m, ((0, f_pad - num_frames), (0, 0)), mode="edge")          # (F_pad, 9)
    return fit_points(c, m, Et3, mu3, tile=tile)


# ----------------------------------------------------------------------------
# Glue: camera matrices, synthetic PCA model, module parameters
# ----------------------------------------------------------------------------
def viewport_matrix(right, left, top, bottom):
    return np.array(
        [[(right - left) / 2.0, 0.0, 0.0, (right + left) / 2.0],
         [0.0, (top - bottom) / 2.0, 0.0, (top + bottom) / 2.0],
         [0.0, 0.0, 0.5, 0.5],
         [0.0, 0.0, 0.0, 1.0]], dtype=np.float32)


def perspective_projection_matrix(width, height, near, far, fovy=0.5):
    aspect = float(width) / float(height)
    t = np.tan(fovy / 2.0) * near
    b, r, l = -t, t * aspect, -t * aspect
    return np.array(
        [[2 * near / (r - l), 0.0, (r + l) / (r - l), 0.0],
         [0.0, 2 * near / (t - b), (t + b) / (t - b), 0.0],
         [0.0, 0.0, -(far + near) / (far - near), -2 * far * near / (far - near)],
         [0.0, 0.0, -1.0, 0.0]], dtype=np.float32)


class LandmarksFitModelPallas:
    def __init__(self, image_width, image_height, lm_indices, num_frames, key):
        ks = jax.random.split(key, 8)
        # Synthetic deterministic stand-in for read_pca_model_torch()
        # (E_id: (3N, 30), E_exp: (3N, 20), means: (3N,), sigmas: (30,)/(20,)).
        E_id = jax.random.normal(ks[0], (3 * N_VERTS, N_ID), jnp.float32)
        E_exp = jax.random.normal(ks[1], (3 * N_VERTS, N_EXP), jnp.float32)
        mean_id = jax.random.uniform(ks[2], (3 * N_VERTS,), jnp.float32, 30.0, 130.0)
        mean_exp = jax.random.uniform(ks[3], (3 * N_VERTS,), jnp.float32, -1.0, 1.0)
        sigma_id = jax.random.uniform(ks[4], (N_ID,), jnp.float32, 0.5, 2.0)
        sigma_exp = jax.random.uniform(ks[5], (N_EXP,), jnp.float32, 0.5, 2.0)

        # Module parameters (shapes per __init__).  __init__ uses zeros for
        # alpha/delta; small non-zero values here so the hot path is exercised.
        self.num_frames = num_frames
        self.alpha = 0.1 * jax.random.normal(ks[6], (N_ID,), jnp.float32)
        self.delta = 0.1 * jax.random.normal(ks[7], (num_frames, N_EXP), jnp.float32)
        self.R = jnp.tile(jnp.array([[1.0, 0.0, 0.0],
                                     [0.0, -1.0, 0.0],
                                     [0.0, 0.0, 1.0]], jnp.float32), (num_frames, 1, 1))
        self.t = jnp.tile(jnp.array([0.0, 0.0, -400.0], jnp.float32), (num_frames, 1))
        V = viewport_matrix(right=image_width, left=0, top=image_height, bottom=0)
        V[1, 1] = -V[1, 1]
        P = perspective_projection_matrix(image_width, image_height, 300, 2000)
        self.V = jnp.asarray(V)
        self.P = jnp.asarray(P)
        # Only rows (0,1,3) and cols 0:3 of M are ever read (homogeneous w = 0).
        self.VP3 = jnp.asarray((V @ P)[[0, 1, 3], :3])               # (3, 3)
        self.lm_indices = jnp.asarray(lm_indices, jnp.int32)

        # ---- static precompute (hoisted out of forward) ----
        # Fold sqrt(sigma) into the basis columns; sum the two means once.
        E_scaled = jnp.concatenate([E_id * jnp.sqrt(sigma_id)[None, :],
                                    E_exp * jnp.sqrt(sigma_exp)[None, :]], axis=1)
        mean_full = mean_id + mean_exp                               # (3N,)
        self._E_scaled = E_scaled                                    # f32, for reference
        self._mean_full = mean_full

        def build_operands(vidx):
            # vidx: (Lp,) lane-padded vertex indices.  Returns the gathered,
            # transposed, coordinate-major basis (3, C_PAD, Lp) in bf16 and the
            # gathered mean (3, Lp) in f32.
            rows = jnp.stack([3 * vidx, 3 * vidx + 1, 3 * vidx + 2])         # (3, Lp)
            Eg = jnp.transpose(E_scaled[rows], (0, 2, 1))                    # (3, 50, Lp)
            Et3 = jnp.zeros((3, C_PAD, vidx.shape[0]), jnp.float32)
            Et3 = Et3.at[:, :C_TOTAL, :].set(Eg).astype(jnp.bfloat16)
            mu3 = mean_full[rows].astype(jnp.float32)                        # (3, Lp)
            return Et3, mu3

        # Landmark basis: pre-gather the 68 static landmark vertices, lane-pad to
        # 128 by repeating landmark 0 (keeps padded lanes finite; sliced off later).
        lm_pad = jnp.concatenate(
            [self.lm_indices,
             jnp.full((LM_PAD - N_LM,), self.lm_indices[0], jnp.int32)])
        self.Et_lm, self.mu_lm = build_operands(lm_pad)                  # (3,64,128), (3,128)
        self.Et_full, self.mu_full = build_operands(
            jnp.arange(N_VERTS, dtype=jnp.int32))                        # (3,64,512), (3,512)

        # Lane-tile sizes (must be multiples of 128 and divide Lp).
        # For a realistic ~28k-vertex BFM use ~512 lanes on v5e/v7x (16/64 MiB
        # VMEM budgets) and 512–2048 on v6e; here 128/256 exercise the pipeline.
        self._tile_lm = LM_PAD
        self._tile_full = 256

    # Batched forward over all frames: one pallas_call, basis resident in VMEM.
    def forward_all(self, only_lm=True):
        if only_lm:
            out = _fit_all_frames(self.alpha, self.delta, self.R, self.VP3,
                                  self.Et_lm, self.mu_lm, tile=self._tile_lm)
            return out[:, :self.num_frames, :N_LM]           # (2, F, 68)
        out = _fit_all_frames(self.alpha, self.delta, self.R, self.VP3,
                              self.Et_full, self.mu_full, tile=self._tile_full)
        return out[:, :self.num_frames, :]                   # (2, F, N_VERTS)

    # Per-frame forward matching the PyTorch module's signature/semantics.
    def forward(self, frame_idx, only_lm=True):
        out = self.forward_all(only_lm)                      # (2, F, n)
        return out[:, frame_idx, :].T                        # (n, 2) == lm.t()[:, :2]

    # Pure-JAX reference (mirrors the torch forward) for validation.
    def reference_forward(self, frame_idx, only_lm=True):
        coeff = jnp.concatenate([self.alpha, self.delta[frame_idx]])
        G = (self._E_scaled @ coeff + self._mean_full).reshape(-1, 3)
        if only_lm:
            G = G[self.lm_indices]
        Gh = jnp.concatenate([G, jnp.zeros((G.shape[0], 1), jnp.float32)], axis=1)
        T = jnp.eye(4, dtype=jnp.float32)
        T = T.at[:3, :3].set(self.R[frame_idx])
        T = T.at[:3, 3].set(self.t[frame_idx])
        lm = (self.V @ self.P @ T) @ Gh.T
        lm = lm / lm[3:4, :]
        return lm[:2, :].T


if __name__ == "__main__":
    key = jax.random.PRNGKey(0)
    lm_indices = (jnp.arange(N_LM, dtype=jnp.int32) * 7) % N_VERTS   # deterministic 68 indices
    model = LandmarksFitModelPallas(image_width=64, image_height=48,
                                    lm_indices=lm_indices, num_frames=2, key=key)

    out = jax.block_until_ready(model.forward(frame_idx=1, only_lm=True))
    assert out.shape == (N_LM, 2) and out.dtype == jnp.float32
    assert bool(jnp.all(jnp.isfinite(out)))
    ref = model.reference_forward(frame_idx=1, only_lm=True)
    assert bool(jnp.allclose(out, ref, rtol=2e-2, atol=0.5))

    all_lm = jax.block_until_ready(model.forward_all(only_lm=True))
    assert all_lm.shape == (2, 2, N_LM) and bool(jnp.all(jnp.isfinite(all_lm)))

    full = jax.block_until_ready(model.forward(frame_idx=0, only_lm=False))
    assert full.shape == (N_VERTS, 2) and bool(jnp.all(jnp.isfinite(full)))
    ref_full = model.reference_forward(frame_idx=0, only_lm=False)
    assert bool(jnp.allclose(full, ref_full, rtol=2e-2, atol=0.5))

    print("KERNEL_OK")
</pallas_src>

<mosaic_0001>
module attributes {stable_mosaic.version = 11 : i64} {
  func.func @_fit_kernel(%arg0: i32, %arg1: memref<8x64xbf16, #tpu.memory_space<vmem>>, %arg2: memref<8x9xf32, #tpu.memory_space<vmem>>, %arg3: memref<3x64x128xbf16, #tpu.memory_space<vmem>>, %arg4: memref<3x128xf32, #tpu.memory_space<vmem>>, %arg5: memref<2x8x128xf32, #tpu.memory_space<vmem>>) attributes {dimension_semantics = [#tpu.dimension_semantics<parallel>], iteration_bounds = array<i64: 1>, scalar_prefetch = 0 : i64, scratch_operands = 0 : i64, tpu.core_type = #tpu.core_type<tc>, window_params = [{pipeline_mode = #tpu.pipeline_mode<synchronous>, transform_indices = @transform_0, window_bounds = array<i64: 8, 64>}, {pipeline_mode = #tpu.pipeline_mode<synchronous>, transform_indices = @transform_1, window_bounds = array<i64: 8, 9>}, {transform_indices = @transform_2, window_bounds = array<i64: 3, 64, 128>}, {transform_indices = @transform_3, window_bounds = array<i64: 3, 128>}, {transform_indices = @transform_4, window_bounds = array<i64: 2, 8, 128>}]} {
    %c0 = arith.constant 0 : index
    %c0_0 = arith.constant 0 : index
    %0 = vector.load %arg1[%c0, %c0_0] : memref<8x64xbf16, #tpu.memory_space<vmem>>, vector<8x64xbf16>
    %c0_1 = arith.constant 0 : index
    %c0_2 = arith.constant 0 : index
    %1 = vector.load %arg2[%c0_1, %c0_2] : memref<8x9xf32, #tpu.memory_space<vmem>>, vector<8x9xf32>
    %c0_3 = arith.constant 0 : index
    %c0_4 = arith.constant 0 : index
    %2 = vector.load %arg4[%c0_3, %c0_4] : memref<3x128xf32, #tpu.memory_space<vmem>>, vector<3x128xf32>
    %c0_5 = arith.constant 0 : index
    %c0_6 = arith.constant 0 : index
    %c0_7 = arith.constant 0 : index
    %3 = vector.load %arg3[%c0_5, %c0_6, %c0_7] : memref<3x64x128xbf16, #tpu.memory_space<vmem>>, vector<1x64x128xbf16>
    %4 = vector.shape_cast %3 : vector<1x64x128xbf16> to vector<64x128xbf16>
    %cst = arith.constant dense<0.000000e+00> : vector<8x128xf32>
    %5 = tpu.matmul %0, %4, %cst {dimension_numbers = #tpu.dot_dimension_numbers<[1], [0], [0], [1], [0, 0, 1, 1], [], []>} : vector<8x64xbf16>, vector<64x128xbf16>, vector<8x128xf32> -> vector<8x128xf32>
    %6 = vector.extract_strided_slice %2 {offsets = [0, 0], sizes = [1, 128], strides = [1, 1]} : vector<3x128xf32> to vector<1x128xf32>
    %7 = vector.broadcast %6 : vector<1x128xf32> to vector<8x128xf32>
    %8 = arith.addf %5, %7 : vector<8x128xf32>
    %c1 = arith.constant 1 : index
    %c0_8 = arith.constant 0 : index
    %c0_9 = arith.constant 0 : index
    %9 = vector.load %arg3[%c1, %c0_8, %c0_9] : memref<3x64x128xbf16, #tpu.memory_space<vmem>>, vector<1x64x128xbf16>
    %10 = vector.shape_cast %9 : vector<1x64x128xbf16> to vector<64x128xbf16>
    %cst_10 = arith.constant dense<0.000000e+00> : vector<8x128xf32>
    %11 = tpu.matmul %0, %10, %cst_10 {dimension_numbers = #tpu.dot_dimension_numbers<[1], [0], [0], [1], [0, 0, 1, 1], [], []>} : vector<8x64xbf16>, vector<64x128xbf16>, vector<8x128xf32> -> vector<8x128xf32>
    %12 = vector.extract_strided_slice %2 {offsets = [1, 0], sizes = [1, 128], strides = [1, 1]} : vector<3x128xf32> to vector<1x128xf32>
    %13 = vector.broadcast %12 : vector<1x128xf32> to vector<8x128xf32>
    %14 = arith.addf %11, %13 : vector<8x128xf32>
    %c2 = arith.constant 2 : index
    %c0_11 = arith.constant 0 : index
    %c0_12 = arith.constant 0 : index
    %15 = vector.load %arg3[%c2, %c0_11, %c0_12] : memref<3x64x128xbf16, #tpu.memory_space<vmem>>, vector<1x64x128xbf16>
    %16 = vector.shape_cast %15 : vector<1x64x128xbf16> to vector<64x128xbf16>
    %cst_13 = arith.constant dense<0.000000e+00> : vector<8x128xf32>
    %17 = tpu.matmul %0, %16, %cst_13 {dimension_numbers = #tpu.dot_dimension_numbers<[1], [0], [0], [1], [0, 0, 1, 1], [], []>} : vector<8x64xbf16>, vector<64x128xbf16>, vector<8x128xf32> -> vector<8x128xf32>
    %18 = vector.extract_strided_slice %2 {offsets = [2, 0], sizes = [1, 128], strides = [1, 1]} : vector<3x128xf32> to vector<1x128xf32>
    %19 = vector.broadcast %18 : vector<1x128xf32> to vector<8x128xf32>
    %20 = arith.addf %17, %19 : vector<8x128xf32>
    %21 = vector.extract_strided_slice %1 {offsets = [0, 0], sizes = [8, 1], strides = [1, 1]} : vector<8x9xf32> to vector<8x1xf32>
    %22 = vector.broadcast %21 : vector<8x1xf32> to vector<8x128xf32>
    %23 = arith.mulf %22, %8 : vector<8x128xf32>
    %24 = vector.extract_strided_slice %1 {offsets = [0, 1], sizes = [8, 1], strides = [1, 1]} : vector<8x9xf32> to vector<8x1xf32>
    %25 = vector.broadcast %24 : vector<8x1xf32> to vector<8x128xf32>
    %26 = arith.mulf %25, %14 : vector<8x128xf32>
    %27 = arith.addf %23, %26 : vector<8x128xf32>
    %28 = vector.extract_strided_slice %1 {offsets = [0, 2], sizes = [8, 1], strides = [1, 1]} : vector<8x9xf32> to vector<8x1xf32>
    %29 = vector.broadcast %28 : vector<8x1xf32> to vector<8x128xf32>
    %30 = arith.mulf %29, %20 : vector<8x128xf32>
    %31 = arith.addf %27, %30 : vector<8x128xf32>
    %32 = vector.extract_strided_slice %1 {offsets = [0, 3], sizes = [8, 1], strides = [1, 1]} : vector<8x9xf32> to vector<8x1xf32>
    %33 = vector.broadcast %32 : vector<8x1xf32> to vector<8x128xf32>
    %34 = arith.mulf %33, %8 : vector<8x128xf32>
    %35 = vector.extract_strided_slice %1 {offsets = [0, 4], sizes = [8, 1], strides = [1, 1]} : vector<8x9xf32> to vector<8x1xf32>
    %36 = vector.broadcast %35 : vector<8x1xf32> to vector<8x128xf32>
    %37 = arith.mulf %36, %14 : vector<8x128xf32>
    %38 = arith.addf %34, %37 : vector<8x128xf32>
    %39 = vector.extract_strided_slice %1 {offsets = [0, 5], sizes = [8, 1], strides = [1, 1]} : vector<8x9xf32> to vector<8x1xf32>
    %40 = vector.broadcast %39 : vector<8x1xf32> to vector<8x128xf32>
    %41 = arith.mulf %40, %20 : vector<8x128xf32>
    %42 = arith.addf %38, %41 : vector<8x128xf32>
    %43 = vector.extract_strided_slice %1 {offsets = [0, 6], sizes = [8, 1], strides = [1, 1]} : vector<8x9xf32> to vector<8x1xf32>
    %44 = vector.broadcast %43 : vector<8x1xf32> to vector<8x128xf32>
    %45 = arith.mulf %44, %8 : vector<8x128xf32>
    %46 = vector.extract_strided_slice %1 {offsets = [0, 7], sizes = [8, 1], strides = [1, 1]} : vector<8x9xf32> to vector<8x1xf32>
    %47 = vector.broadcast %46 : vector<8x1xf32> to vector<8x128xf32>
    %48 = arith.mulf %47, %14 : vector<8x128xf32>
    %49 = arith.addf %45, %48 : vector<8x128xf32>
    %50 = vector.extract_strided_slice %1 {offsets = [0, 8], sizes = [8, 1], strides = [1, 1]} : vector<8x9xf32> to vector<8x1xf32>
    %51 = vector.broadcast %50 : vector<8x1xf32> to vector<8x128xf32>
    %52 = arith.mulf %51, %20 : vector<8x128xf32>
    %53 = arith.addf %49, %52 : vector<8x128xf32>
    %54 = tpu.reciprocal %53 {approx = true} : vector<8x128xf32> -> vector<8x128xf32>
    %55 = arith.mulf %31, %54 : vector<8x128xf32>
    %56 = arith.mulf %42, %54 : vector<8x128xf32>
    %57 = vector.shape_cast %55 : vector<8x128xf32> to vector<1x8x128xf32>
    %58 = vector.shape_cast %56 : vector<8x128xf32> to vector<1x8x128xf32>
    %59 = tpu.concatenate %57, %58 in 0 : vector<1x8x128xf32>, vector<1x8x128xf32> -> vector<2x8x128xf32>
    %c0_14 = arith.constant 0 : index
    %c0_15 = arith.constant 0 : index
    %c0_16 = arith.constant 0 : index
    %60 = vector.load %arg5[%c0_14, %c0_15, %c0_16] : memref<2x8x128xf32, #tpu.memory_space<vmem>>, vector<2x8x128xf32>
    tpu.vector_store %arg5[%c0_14, %c0_15, %c0_16], %59 {strides = array<i32>} : memref<2x8x128xf32, #tpu.memory_space<vmem>>, vector<2x8x128xf32>,
    return
  }
  func.func @transform_0(%arg0: i32) -> (i32, i32) {
    %c0_i32 = arith.constant 0 : i32
    %c0_i32_0 = arith.constant 0 : i32
    %c0_i32_1 = arith.constant 0 : i32
    return %c0_i32, %c0_i32_0 : i32, i32
  }
  func.func @transform_1(%arg0: i32) -> (i32, i32) {
    %c0_i32 = arith.constant 0 : i32
    %c0_i32_0 = arith.constant 0 : i32
    %c0_i32_1 = arith.constant 0 : i32
    return %c0_i32, %c0_i32_0 : i32, i32
  }
  func.func @transform_2(%arg0: i32) -> (i32, i32, i32) {
    %c0_i32 = arith.constant 0 : i32
    %c0_i32_0 = arith.constant 0 : i32
    %c0_i32_1 = arith.constant 0 : i32
    return %c0_i32, %c0_i32_0, %arg0 : i32, i32, i32
  }
  func.func @transform_3(%arg0: i32) -> (i32, i32) {
    %c0_i32 = arith.constant 0 : i32
    %c0_i32_0 = arith.constant 0 : i32
    return %c0_i32, %arg0 : i32, i32
  }
  func.func @transform_4(%arg0: i32) -> (i32, i32, i32) {
    %c0_i32 = arith.constant 0 : i32
    %c0_i32_0 = arith.constant 0 : i32
    %c0_i32_1 = arith.constant 0 : i32
    return %c0_i32, %c0_i32_0, %arg0 : i32, i32, i32
  }
}

</mosaic_0001>

<bundles_post_ra>
// kernel: _fit_all_frames.1
= control target key start
LH: loop header
LB: loop body
LE: loop exit
PB: predicated region body
PF: predicated region fallthrough
CT: control target
= control target key end

     0   :  { %9 = vsyncpa [#allocation3], 0  ;;  %s560_s0 = inlined_call_operand.vmem [shape: bf16[8,64], index: 0, kind: input, shape index: {}]   ;;  %s561_s1 = inlined_call_operand.vmem [shape: f32[8,9], index: 1, kind: input, shape index: {}]   ;;  %s562_s2 = inlined_call_operand.hbm [shape: bf16[3,64,128], index: 2, kind: input, shape index: {}]   ;;  %s563_s3 = inlined_call_operand.vmem [shape: f32[3,128], index: 3, kind: input, shape index: {}]   ;;  %s564_s4 = inlined_call_operand.hbm [shape: f32[2,8,128], index: 4, kind: output, shape index: {}]  }
   0x1   :  { %10 = vsyncpa [#allocation4], 0  ;;  %s495_s15 = smov [#allocation2]  }
   0x2   :  { %s20_s16 = sshll.u32 %s495_s15, 4  ;;  %s21_s16 = int_to_ptr.vmem [resolvable:$true] %s20_s16 }
   0x3   :  { %s459_s17 = scalar_lea.vmem %s21_s16, 1536  ;;  %p464_p1 = scmp.lt.s32.totalorder %s21_s16, %s21_s16 }
   0x4   :  { %p460_p0 = scmp.ne.s32.totalorder %s21_s16, %s459_s17  ;;  %p465_p2 = scmp.lt.s32.totalorder %s459_s17, %s459_s17 }
   0x6   :  { %p466_p3 = por %p465_p2, %p464_p1 }
   0x8   :  { %p467_p4 = pnand %p466_p3, %p460_p0 }
   0xa   :  { %470 = shalt.err (!%p467_p4)
}
   0xb   :  { %s496_s18 = smov 64   ;;  %s497_s19 = smov 4  }
   0xc   :  { %26 = dma.hbm_to_vmem [thread:$0]  %s562_s2, 1536, %s21_s16, [#allocation3], %s496_s18, %s496_s18, %s497_s19  }
   0xd   :  { %491 = dma.done.wait [#allocation3], 1536  }
   0xe   :  { %492 = vsyncadd [#allocation3], 4294965760  ;;  %v498_v0 = vmov 0.0   ;;  %vm499_vm0 = vmmov 0   ;;  %v500_v1 = vmov 8   ;;  %v501_v2 = vmov 6  }
   0xf   :  { %374 = vmatprep.subr.bf16.mxu0 %v498_v0  ;;  %386 = vmatprep.subr.bf16.mxu1 %v498_v0  ;;  %v437_v3 = vld [vmem:[#allocation2 + $0x18] sm:$0xff]   ;;  %v439_v5 = vld [vmem:[#allocation2 + $0x10] sm:$0xff]   ;;  %v441_v7 = vld [vmem:[#allocation2 + $0x8] sm:$0xff]   ;;  %vm72_vm1 = vcmask 523264   ;;  %v502_v14 = vmov 0   ;;  %v503_v16 = vmov 7   ;;  %v44_v24 = vlaneseq }
  0x10   :  { %382 = vmatprep.mubr.msk.bf16.mxu0 %vm499_vm0, %v498_v0  ;;  %394 = vmatprep.mubr.msk.bf16.mxu1 %vm499_vm0, %v498_v0  ;;  %v438_v4 = vld [vmem:[#allocation2 + $0x38] sm:$0xff]   ;;  %v440_v6 = vld [vmem:[#allocation2 + $0x30] sm:$0xff]   ;;  %v442_v8 = vld [vmem:[#allocation2 + $0x28] sm:$0xff]   ;;  %v504_v18 = vmov 1   ;;  %v505_v19 = vmov 3   ;;  %v506_v21 = vmov 4  }
  0x11   :  { %429 = vset.pattern.permute.xlu1 %v500_v1  ;;  %427 = vset.pattern.permute.xlu0 %v501_v2  ;;  %v443_v9 = vld [vmem:[#allocation2] sm:$0xff]   ;;  %v445_v13 = vld [vmem:[#allocation2 + $0x58] sm:$0xff]   ;;  %v446_v15 = vld [vmem:[#allocation2 + $0x50] sm:$0xff]   ;;  %v507_v22 = vmov 5   ;;  %v508_v23 = vmov 2   ;;  %v45_v25 = vshrl.u32 %v44_v24, 7 }
  0x12   :  { %375 = vmatpush3.bf16.msra.mxu0 %v437_v3  ;;  %387 = vmatpush3.bf16.msra.mxu1 %v438_v4  ;;  %v444_v10 = vld [vmem:[#allocation2 + $0x20] sm:$0xff]   ;;  %v447_v17 = vld [vmem:[#allocation2 + $0x48] sm:$0xff]  }
  0x13   :  { %376 = vmatprep.subr.bf16.mxu0 %v498_v0  ;;  %388 = vmatprep.subr.bf16.mxu1 %v498_v0  ;;  %v34_v11 = vld [vmem:[%s561_s1] sm:$0xff]  ;;  %v46_v29 = vsub.s32 0, %v45_v25  ;;  %v127_v30 = vsub.s32 1, %v45_v25  ;;  %v204_v41 = vsub.s32 2, %v45_v25 }
  0x14   :  { %317 = vperm.xlu1 %429, %v34_v11   ;;  %306 = vperm.xlu0 %427, %v34_v11   ;;  %v33_v12 = vld [vmem:[%s560_s0] sm:$0xf] }
  0x15   :  { %v448_v20 = vld [vmem:[#allocation2 + $0x40] sm:$0xff]  }
  0x16   :  { %377 = vmatpush3.bf16.msra.mxu0 %v439_v5  ;;  %389 = vmatpush3.bf16.msra.mxu1 %v440_v6  ;;  %v35_v32 = vld [vmem:[%s563_s3] sm:$0x7]  ;;  %s509_s3 = smov [#allocation5]  }
  0x17   :  { %378 = vmatprep.subr.bf16.mxu0 %v498_v0  ;;  %390 = vmatprep.subr.bf16.mxu1 %v498_v0  ;;  %v47_v37 = vrot.slane %v35_v32, %v46_v29  ;;  %v128_v38 = vrot.slane %v35_v32, %v127_v30  ;;  %v205_v45 = vrot.slane %v35_v32, %v204_v41  ;;  %s332_s25 = sshll.u32 %s509_s3, 4  ;;  %s333_s25 = int_to_ptr.vmem [resolvable:$true] %s332_s25 }
  0x18   :  { %430 = vset.pattern.permute.xlu1 %v502_v14  ;;  %428 = vset.pattern.permute.xlu0 %v503_v16  ;;  %s471_s26 = scalar_lea.vmem %s333_s25, 256  ;;  %p476_p6 = scmp.lt.s32.totalorder %s333_s25, %s333_s25 }
  0x19   :  { %272 = vperm.xlu1 %430, %v34_v11   ;;  %311 = vperm.xlu0 %428, %v34_v11   ;;  %p472_p5 = scmp.ne.s32.totalorder %s333_s25, %s471_s26  ;;  %p477_p7 = scmp.lt.s32.totalorder %s471_s26, %s471_s26 }
  0x1a   :  { %379 = vmatpush3.bf16.msra.mxu0 %v441_v7  ;;  %391 = vmatpush3.bf16.msra.mxu1 %v442_v8 }
  0x1b   :  { %380 = vmatprep.subr.bf16.mxu0 %v498_v0  ;;  %392 = vmatprep.subr.bf16.mxu1 %v498_v0  ;;  %p478_p8 = por %p477_p7, %p476_p6 }
  0x1d   :  { %431 = vset.pattern.permute.xlu1 %v504_v18  ;;  %432 = vset.pattern.permute.xlu0 %v505_v19  ;;  %p479_p9 = pnand %p478_p8, %p472_p5 }
  0x1e   :  { %381 = vmatpush3.bf16.msra.mxu0 %v443_v9  ;;  %393 = vmatpush3.bf16.msra.mxu1 %v444_v10 }
  0x1f   :  { %398 = vmatprep.subr.bf16.mxu0 %v498_v0  ;;  %277 = vperm.xlu1 %431, %v34_v11  }
  0x20   :  { %289 = vperm.xlu0 %432, %v34_v11  }
  0x21   :  { %383 = vmatmul.mubr.msk.bf16.vlgmr.msra.gmra.mxu0 %vm72_vm1, %v33_v12  ;;  %395 = vmatmul.mubr.msk.bf16.vlgmr.msra.gmra.mxu1 %vm72_vm1, %v33_v12 }
  0x22   :  { %399 = vmatpush3.bf16.msra.mxu0 %v445_v13  ;;  %406 = vmatprep.mubr.msk.bf16.mxu0 %vm499_vm0, %v498_v0 }
  0x23   :  { %400 = vmatprep.subr.bf16.mxu0 %v498_v0  ;;  %433 = vset.pattern.permute.xlu1 %v506_v21 }
  0x24   :  { %294 = vperm.xlu1 %433, %v34_v11   ;;  %435 = vset.pattern.permute.xlu0 %v507_v22 }
  0x25   :  { %300 = vperm.xlu0 %435, %v34_v11  }
  0x26   :  { %401 = vmatpush3.bf16.msra.mxu0 %v446_v15 }
  0x27   :  { %402 = vmatprep.subr.bf16.mxu0 %v498_v0 }
  0x28   :  { %434 = vset.pattern.permute.xlu1 %v508_v23 }
  0x29   :  { %283 = vperm.xlu1 %434, %v34_v11   ;;  %436 = vset.pattern.permute.xlu0 %v500_v1 }
  0x2a   :  { %403 = vmatpush3.bf16.msra.mxu0 %v447_v17 }
  0x2b   :  { %404 = vmatprep.subr.bf16.mxu0 %v498_v0 }
  0x2e   :  { %405 = vmatpush3.bf16.msra.mxu0 %v448_v20 }
  0x31   :  { %407 = vmatmul.mubr.msk.bf16.vlgmr.msra.gmra.mxu0 %vm72_vm1, %v33_v12 }
  0x8f   :  { %v318_v35 = vpop.permute.xlu1 %317  ;;  %v307_v40 = vpop.permute.xlu0 %306 }
  0x94   :  { %v273_v44 = vpop.permute.xlu1 %272  ;;  %v312_v46 = vpop.permute.xlu0 %311 }
  0x9a   :  { %v278_v51 = vpop.permute.xlu1 %277 }
  0x9b   :  { %v290_v59 = vpop.permute.xlu0 %289 }
  0x9f   :  { %v295_v58 = vpop.permute.xlu1 %294 }
  0xa0   :  { %v301_v61 = vpop.permute.xlu0 %300 }
  0xa4   :  { %v284_v60 = vpop.permute.xlu1 %283 }
  0xe1   :  { %v110_v26 = vpop.f32.mrf.mxu0  ;;  %v187_v27 = vpop.f32.mrf.mxu1 }
  0xe2   :  { %v111_v42 = vadd.f32 %v110_v26, %v47_v37  ;;  %v188_v43 = vadd.f32 %v187_v27, %v128_v38 }
  0xe3   :  { %v384_v28 = vpop.f32.mrf.mxu0  ;;  %v396_v31 = vpop.f32.mrf.mxu1 }
  0xe4   :  { %v309_v47 = vmul.f32 %v307_v40, %v111_v42  ;;  %v314_v48 = vmul.f32 %v312_v46, %v188_v43  ;;  %v275_v62 = vmul.f32 %v273_v44, %v111_v42  ;;  %v280_v63 = vmul.f32 %v278_v51, %v188_v43 }
  0xe5   :  { %v113_v33 = vpop.f32.mrf.mxu0  ;;  %v190_v34 = vpop.f32.mrf.mxu1  ;;  %v297_v0 = vmul.f32 %v295_v58, %v188_v43  ;;  %v292_v1 = vmul.f32 %v290_v59, %v111_v42 }
  0xe6   :  { %v315_v53 = vadd.f32 %v314_v48, %v309_v47  ;;  %v281_v5 = vadd.f32 %v280_v63, %v275_v62 }
  0xe7   :  { %v385_v36 = vpop.f32.mrf.mxu0  ;;  %v397_v39 = vpop.f32.mrf.mxu1  ;;  %v298_v4 = vadd.f32 %v297_v0, %v292_v1 }
  0xf1   :  { %v264_v49 = vpop.f32.mrf.mxu0 }
  0xf2   :  { %v265_v50 = vadd.f32 %v264_v49, %v205_v45 }
  0xf3   :  { %v408_v52 = vpop.f32.mrf.mxu0 }
  0xf4   :  { %v320_v54 = vmul.f32 %v318_v35, %v265_v50  ;;  %v286_v2 = vmul.f32 %v284_v60, %v265_v50  ;;  %v303_v3 = vmul.f32 %v301_v61, %v265_v50 }
  0xf5   :  { %v267_v55 = vpop.f32.mrf.mxu0 }
  0xf6   :  { %v321_v56 = vadd.f32 %v320_v54, %v315_v53  ;;  %v287_v6 = vadd.f32 %v286_v2, %v281_v5  ;;  %v304_v7 = vadd.f32 %v303_v3, %v298_v4 }
  0xf7   :  { %v409_v57 = vpop.f32.mrf.mxu0 }
  0xf8   :  { %449 = vrcp.f32 %v321_v56 }
 0x105   :  { %v450_v8 = vpop.eup %449 }
 0x106   :  { %v323_v9 = vmul.f32 %v450_v8, %v287_v6  ;;  %v324_v10 = vmul.f32 %v450_v8, %v304_v7 }
 0x108   :  { %325 = vst [vmem:[#allocation5] sm:$0xff] %v323_v9  ;;  %326 = vst [vmem:[#allocation5 + $0x8] sm:$0xff] %v324_v10 }
 0x109   :  { %482 = shalt.err (!%p479_p9)
}
 0x10a   :  { %s510_s27 = smov 128   ;;  %s511_s28 = smov 8  }
 0x10b   :  { %338 = dma.vmem_to_hbm [thread:$0]  %s333_s25, 256, %s564_s4, [#allocation4], %s510_s27, %s510_s27, %s511_s28  }
 0x10c   :  { %493 = dma.done.wait [#allocation4], 256  }
 0x10d   :  { %494 = vsyncadd [#allocation4], 4294967040 }
 0x10e   :  { %342 = vsyncpa [#allocation3], 1 }
 0x10f   :  { %343 = vsyncpa [#allocation4], 1 }

</bundles_post_ra>
